<compile_context>
chip_gen: v7x
topology: tpu7x:2x2x1
jax: 0.10.0
libtpu: 0.0.40
codegen_flags: <defaults>
</compile_context>

<pallas_src>
import jax
import jax.numpy as jnp
from jax import lax
from jax.experimental import pallas as pl
from jax.experimental.pallas import tpu as pltpu


def _round_up(n, m):
    return ((n + m - 1) // m) * m


def ppo_critic_kernel(x_ref, w1t_ref, b1_ref, w2t_ref, b2_ref, w3_ref, b3_ref, out_ref):
    """Fused 3-layer MLP critic on one (tile_b, input_dim) block of x.

    Batch-on-lanes formulation: hidden activations are (hidden, tile_b) so the
    batch occupies the 128-wide lane axis (full-lane tanh / bias / stores).

    x_ref:   (tile_b, input_dim)   streamed per grid step
    w1t_ref: (h1, input_dim)       W1^T, VMEM-resident
    b1_ref:  (h1, 1)
    w2t_ref: (h2, h1)              W2^T, VMEM-resident
    b2_ref:  (h2, 1)
    w3_ref:  (1, h2)               W3 row, VMEM-resident
    b3_ref:  (1, 1)                scalar bias in SMEM
    out_ref: (1, tile_b)           lane-dense value row
    """
    x = x_ref[...]

    # Layer 1: h1t = W1^T @ x^T + b1  -> (h1, tile_b).
    # Contract both operands on their last dim (A @ B^T pattern): no explicit
    # transpose of the big x block is materialized; batch lands on lanes.
    h1t = jnp.tanh(
        lax.dot_general(
            w1t_ref[...], x, (((1,), (1,)), ((), ())),
            preferred_element_type=jnp.float32,
        )
        + b1_ref[...]
    )

    # Layer 2: (h2, h1) @ (h1, tile_b). Cast the activation to the weight dtype
    # so a bf16 compute_dtype actually uses the bf16 MXU path (accum stays f32).
    h2t = jnp.tanh(
        jnp.dot(w2t_ref[...], h1t.astype(w2t_ref.dtype),
                preferred_element_type=jnp.float32)
        + b2_ref[...]
    )

    # Head: (1, h2) @ (h2, tile_b) -> lane-dense (1, tile_b) value row, plus the
    # scalar output bias from SMEM.
    value = jnp.dot(w3_ref[...], h2t.astype(w3_ref.dtype),
                    preferred_element_type=jnp.float32) + b3_ref[0, 0]

    out_ref[...] = value.astype(out_ref.dtype)


def ppo_critic_forward(x, params, *, block_batch=8192, compute_dtype=None):
    """params = (w1, b1, w2, b2, w3, b3); weights stored (in_features, out_features).

    Returns the critic value of shape (batch, 1), float32.
    """
    w1, b1, w2, b2, w3, b3 = params
    batch, input_dim = x.shape
    h1 = w1.shape[1]
    h2 = w2.shape[1]

    # Re-layout the (tiny) parameters for the batch-on-lanes formulation.
    w1t = jnp.asarray(w1).T                              # (h1, input_dim)
    w2t = jnp.asarray(w2).T                              # (h2, h1)
    w3r = jnp.asarray(w3).reshape(1, h2)                 # (1, h2)
    b1c = jnp.asarray(b1, jnp.float32).reshape(h1, 1)    # (h1, 1)
    b2c = jnp.asarray(b2, jnp.float32).reshape(h2, 1)    # (h2, 1)
    b3s = jnp.asarray(b3, jnp.float32).reshape(1, 1)     # scalar bias -> SMEM

    if compute_dtype is not None:
        # Optional bf16 input/weight stream (halves HBM bytes on the dominant x
        # stream on v5e/v6e/v7x); accumulation and tanh remain f32.
        x = x.astype(compute_dtype)
        w1t = w1t.astype(compute_dtype)
        w2t = w2t.astype(compute_dtype)
        w3r = w3r.astype(compute_dtype)

    # Batch tile: whole batch as one block when it fits (block == full array
    # dims, so no (8,128) constraint); otherwise a multiple of 128 so both the
    # x block (sublane axis) and the lane-dense output block tile legally.
    # No padding copy of x: grid = cdiv, Pallas masks the partial last block.
    if batch <= block_batch:
        tile_b = batch
    else:
        tile_b = _round_up(min(block_batch, batch), 128)
    grid = (pl.cdiv(batch, tile_b),)

    act_itemsize = jnp.dtype(x.dtype).itemsize
    hid = max(h1, h2)

    # Explicit VMEM budget (v7x only has 64 MiB physical): double-buffered x and
    # out blocks + f32 hidden intermediates + params/overhead.
    vmem_need = (
        2 * tile_b * input_dim * act_itemsize      # x, double-buffered
        + 2 * tile_b * 4                           # (1, tile_b) out, double-buffered
        + 4 * tile_b * hid * 4                     # h1t/h2t/temporaries (f32)
        + 2 * 1024 * 1024                          # params + fixed overhead
    )
    vmem_limit = int(min(max(2 * vmem_need, 16 * 1024 * 1024), 64 * 1024 * 1024))

    param_bytes = int(
        w1t.size * w1t.dtype.itemsize
        + w2t.size * w2t.dtype.itemsize
        + w3r.size * w3r.dtype.itemsize
        + (b1c.size + b2c.size + b3s.size) * 4
    )
    cost = pl.CostEstimate(
        flops=2 * batch * (input_dim * h1 + h1 * h2 + h2),
        transcendentals=batch * (h1 + h2),
        bytes_accessed=batch * input_dim * act_itemsize + batch * 4 + param_bytes,
    )

    out_row = pl.pallas_call(
        ppo_critic_kernel,
        out_shape=jax.ShapeDtypeStruct((1, batch), jnp.float32),
        grid=grid,
        in_specs=[
            # x: streamed (auto double-buffered) over the batch grid.
            pl.BlockSpec((tile_b, input_dim), lambda i: (i, 0)),
            # Parameters: constant index_map -> fetched once, VMEM-resident.
            pl.BlockSpec((h1, input_dim), lambda i: (0, 0)),
            pl.BlockSpec((h1, 1), lambda i: (0, 0)),
            pl.BlockSpec((h2, h1), lambda i: (0, 0)),
            pl.BlockSpec((h2, 1), lambda i: (0, 0)),
            pl.BlockSpec((1, h2), lambda i: (0, 0)),
            # Scalar output bias lives in SMEM.
            pl.BlockSpec(memory_space=pltpu.MemorySpace.SMEM),
        ],
        # Lane-dense output row: full 128-lane stores instead of 1-lane masked.
        out_specs=pl.BlockSpec((1, tile_b), lambda i: (0, i)),
        compiler_params=pltpu.CompilerParams(
            # "parallel" lets megacore parts split the batch axis across TCs and
            # is a portable no-op on single-TC parts (pltpu.CORE_PARALLEL could
            # be forced on v7x after verifying the 2-TC split in a trace).
            dimension_semantics=(pltpu.PARALLEL,),
            vmem_limit_bytes=vmem_limit,
        ),
        cost_estimate=cost,
    )(x, w1t, b1c, w2t, b2c, w3r, b3s)

    # (1, batch) row -> (batch, 1) column; layout plumbing only (batch*4 bytes).
    return out_row.reshape(batch, 1)


def init_params(key, input_dim, hidden_dim):
    """Deterministic synthetic init (the PyTorch 'critic' orthogonal init is
    approximated with scaled normals; init is host-side, not part of forward)."""
    dims = [input_dim] + list(hidden_dim) + [1]
    params = []
    keys = jax.random.split(key, len(dims) - 1)
    for i, (d_in, d_out) in enumerate(zip(dims[:-1], dims[1:])):
        gain = 1.0 if i == len(dims) - 2 else jnp.sqrt(2.0)
        w = gain * jax.random.normal(keys[i], (d_in, d_out), jnp.float32) / jnp.sqrt(d_in)
        b = jnp.zeros((1, d_out), jnp.float32)
        params.extend([w, b])
    return tuple(params)


def reference_forward(x, params):
    w1, b1, w2, b2, w3, b3 = params
    h1 = jnp.tanh(x @ w1 + b1)
    h2 = jnp.tanh(h1 @ w2 + b2)
    return h2 @ w3 + b3


if __name__ == "__main__":
    key = jax.random.PRNGKey(0)
    k_x, k_p, k_x2 = jax.random.split(key, 3)

    # Small shapes consistent with the module: states of dim 16, hidden_dim=[32, 32].
    batch, input_dim, hidden_dim = 8, 16, [32, 32]
    x = jax.random.normal(k_x, (batch, input_dim), jnp.float32)
    params = init_params(k_p, input_dim, hidden_dim)

    value = jax.block_until_ready(ppo_critic_forward(x, params))
    ref = reference_forward(x, params)
    assert value.shape == (batch, 1)
    assert jnp.allclose(value, ref, atol=1e-4, rtol=1e-4), float(jnp.max(jnp.abs(value - ref)))

    # Multi-step grid with a partial (masked) last block, no wrapper-side padding.
    x2 = jax.random.normal(k_x2, (300, input_dim), jnp.float32)
    value2 = jax.block_until_ready(ppo_critic_forward(x2, params, block_batch=128))
    ref2 = reference_forward(x2, params)
    assert value2.shape == (300, 1)
    assert jnp.allclose(value2, ref2, atol=1e-4, rtol=1e-4), float(jnp.max(jnp.abs(value2 - ref2)))

    # bf16 input/weight stream (perf path); f32 accumulation, loose tolerance.
    value3 = jax.block_until_ready(
        ppo_critic_forward(x2, params, block_batch=128, compute_dtype=jnp.bfloat16))
    assert value3.shape == (300, 1)
    assert jnp.allclose(value3, ref2, atol=1e-1, rtol=1e-1), float(jnp.max(jnp.abs(value3 - ref2)))

    print("KERNEL_OK")
</pallas_src>

<mosaic_0001>
module attributes {stable_mosaic.version = 11 : i64} {
  func.func @ppo_critic_kernel(%arg0: i32, %arg1: memref<8x16xf32, #tpu.memory_space<vmem>>, %arg2: memref<32x16xf32, #tpu.memory_space<vmem>>, %arg3: memref<32x1xf32, #tpu.memory_space<vmem>>, %arg4: memref<32x32xf32, #tpu.memory_space<vmem>>, %arg5: memref<32x1xf32, #tpu.memory_space<vmem>>, %arg6: memref<1x32xf32, #tpu.memory_space<vmem>>, %arg7: memref<1x1xf32, #tpu.memory_space<smem>>, %arg8: memref<1x8xf32, #tpu.memory_space<vmem>>) attributes {dimension_semantics = [#tpu.dimension_semantics<parallel>], iteration_bounds = array<i64: 1>, scalar_prefetch = 0 : i64, scratch_operands = 0 : i64, tpu.core_type = #tpu.core_type<tc>, window_params = [{transform_indices = @transform_0, window_bounds = array<i64: 8, 16>}, {pipeline_mode = #tpu.pipeline_mode<synchronous>, transform_indices = @transform_1, window_bounds = array<i64: 32, 16>}, {pipeline_mode = #tpu.pipeline_mode<synchronous>, transform_indices = @transform_2, window_bounds = array<i64: 32, 1>}, {pipeline_mode = #tpu.pipeline_mode<synchronous>, transform_indices = @transform_3, window_bounds = array<i64: 32, 32>}, {pipeline_mode = #tpu.pipeline_mode<synchronous>, transform_indices = @transform_4, window_bounds = array<i64: 32, 1>}, {pipeline_mode = #tpu.pipeline_mode<synchronous>, transform_indices = @transform_5, window_bounds = array<i64: 1, 32>}, {transform_indices = @transform_6, window_bounds = array<i64: 1, 1>}, {transform_indices = @transform_7, window_bounds = array<i64: 1, 8>}]} {
    %c0 = arith.constant 0 : index
    %c0_0 = arith.constant 0 : index
    %0 = vector.load %arg1[%c0, %c0_0] : memref<8x16xf32, #tpu.memory_space<vmem>>, vector<8x16xf32>
    %c0_1 = arith.constant 0 : index
    %c0_2 = arith.constant 0 : index
    %1 = vector.load %arg2[%c0_1, %c0_2] : memref<32x16xf32, #tpu.memory_space<vmem>>, vector<32x16xf32>
    %cst = arith.constant dense<0.000000e+00> : vector<32x8xf32>
    %2 = tpu.matmul %1, %0, %cst {dimension_numbers = #tpu.dot_dimension_numbers<[1], [1], [0], [0], [0, 0, 1, 0], [], []>} : vector<32x16xf32>, vector<8x16xf32>, vector<32x8xf32> -> vector<32x8xf32>
    %c0_3 = arith.constant 0 : index
    %c0_4 = arith.constant 0 : index
    %3 = vector.load %arg3[%c0_3, %c0_4] : memref<32x1xf32, #tpu.memory_space<vmem>>, vector<32x1xf32>
    %4 = vector.broadcast %3 : vector<32x1xf32> to vector<32x8xf32>
    %5 = arith.addf %2, %4 : vector<32x8xf32>
    %6 = math.tanh %5 : vector<32x8xf32>
    %c0_5 = arith.constant 0 : index
    %c0_6 = arith.constant 0 : index
    %7 = vector.load %arg4[%c0_5, %c0_6] : memref<32x32xf32, #tpu.memory_space<vmem>>, vector<32x32xf32>
    %cst_7 = arith.constant dense<0.000000e+00> : vector<32x8xf32>
    %8 = tpu.matmul %7, %6, %cst_7 {dimension_numbers = #tpu.dot_dimension_numbers<[1], [0], [0], [1], [0, 0, 1, 1], [], []>} : vector<32x32xf32>, vector<32x8xf32>, vector<32x8xf32> -> vector<32x8xf32>
    %c0_8 = arith.constant 0 : index
    %c0_9 = arith.constant 0 : index
    %9 = vector.load %arg5[%c0_8, %c0_9] : memref<32x1xf32, #tpu.memory_space<vmem>>, vector<32x1xf32>
    %10 = vector.broadcast %9 : vector<32x1xf32> to vector<32x8xf32>
    %11 = arith.addf %8, %10 : vector<32x8xf32>
    %12 = math.tanh %11 : vector<32x8xf32>
    %c0_10 = arith.constant 0 : index
    %c0_11 = arith.constant 0 : index
    %13 = vector.load %arg6[%c0_10, %c0_11] : memref<1x32xf32, #tpu.memory_space<vmem>>, vector<1x32xf32>
    %cst_12 = arith.constant dense<0.000000e+00> : vector<1x8xf32>
    %14 = tpu.matmul %13, %12, %cst_12 {dimension_numbers = #tpu.dot_dimension_numbers<[1], [0], [0], [1], [0, 0, 1, 1], [], []>} : vector<1x32xf32>, vector<32x8xf32>, vector<1x8xf32> -> vector<1x8xf32>
    %c0_13 = arith.constant 0 : index
    %c0_14 = arith.constant 0 : index
    %15 = memref.load %arg7[%c0_13, %c0_14] : memref<1x1xf32, #tpu.memory_space<smem>>
    %16 = vector.broadcast %15 : f32 to vector<1x8xf32>
    %17 = arith.addf %14, %16 : vector<1x8xf32>
    %c0_15 = arith.constant 0 : index
    %c0_16 = arith.constant 0 : index
    %18 = vector.load %arg8[%c0_15, %c0_16] : memref<1x8xf32, #tpu.memory_space<vmem>>, vector<1x8xf32>
    tpu.vector_store %arg8[%c0_15, %c0_16], %17 {strides = array<i32>} : memref<1x8xf32, #tpu.memory_space<vmem>>, vector<1x8xf32>,
    return
  }
  func.func @transform_0(%arg0: i32) -> (i32, i32) {
    %c0_i32 = arith.constant 0 : i32
    %c0_i32_0 = arith.constant 0 : i32
    return %arg0, %c0_i32 : i32, i32
  }
  func.func @transform_1(%arg0: i32) -> (i32, i32) {
    %c0_i32 = arith.constant 0 : i32
    %c0_i32_0 = arith.constant 0 : i32
    %c0_i32_1 = arith.constant 0 : i32
    return %c0_i32, %c0_i32_0 : i32, i32
  }
  func.func @transform_2(%arg0: i32) -> (i32, i32) {
    %c0_i32 = arith.constant 0 : i32
    %c0_i32_0 = arith.constant 0 : i32
    %c0_i32_1 = arith.constant 0 : i32
    return %c0_i32, %c0_i32_0 : i32, i32
  }
  func.func @transform_3(%arg0: i32) -> (i32, i32) {
    %c0_i32 = arith.constant 0 : i32
    %c0_i32_0 = arith.constant 0 : i32
    %c0_i32_1 = arith.constant 0 : i32
    return %c0_i32, %c0_i32_0 : i32, i32
  }
  func.func @transform_4(%arg0: i32) -> (i32, i32) {
    %c0_i32 = arith.constant 0 : i32
    %c0_i32_0 = arith.constant 0 : i32
    %c0_i32_1 = arith.constant 0 : i32
    return %c0_i32, %c0_i32_0 : i32, i32
  }
  func.func @transform_5(%arg0: i32) -> (i32, i32) {
    %c0_i32 = arith.constant 0 : i32
    %c0_i32_0 = arith.constant 0 : i32
    %c0_i32_1 = arith.constant 0 : i32
    return %c0_i32, %c0_i32_0 : i32, i32
  }
  func.func @transform_6(%arg0: i32) -> (i32, i32) {
    %c0_i32 = arith.constant 0 : i32
    %c0_i32_0 = arith.constant 0 : i32
    %c0_i32_1 = arith.constant 0 : i32
    return %c0_i32, %c0_i32_0 : i32, i32
  }
  func.func @transform_7(%arg0: i32) -> (i32, i32) {
    %c0_i32 = arith.constant 0 : i32
    %c0_i32_0 = arith.constant 0 : i32
    return %c0_i32, %arg0 : i32, i32
  }
}

</mosaic_0001>

<bundles_post_ra>
// kernel: tpu_custom_call.1
= control target key start
LH: loop header
LB: loop body
LE: loop exit
PB: predicated region body
PF: predicated region fallthrough
CT: control target
= control target key end

     0   :  { %vm57_vm0 = vcmask 130048   ;;  %v506_v4 = vmov 0   ;;  %s631_s0 = inlined_call_operand.vmem [shape: f32[8,16], index: 0, kind: input, shape index: {}]   ;;  %s632_s1 = inlined_call_operand.vmem [shape: f32[32,16], index: 1, kind: input, shape index: {}]   ;;  %s633_s2 = inlined_call_operand.vmem [shape: f32[32,1], index: 2, kind: input, shape index: {}]   ;;  %s634_s3 = inlined_call_operand.vmem [shape: f32[32,32], index: 3, kind: input, shape index: {}]   ;;  %s635_s4 = inlined_call_operand.vmem [shape: f32[32,1], index: 4, kind: input, shape index: {}]   ;;  %s636_s5 = inlined_call_operand.vmem [shape: f32[1,32], index: 5, kind: input, shape index: {}]   ;;  %s637_s6 = inlined_call_operand.<no memory space> [shape: f32[1,1], index: 6, kind: input, shape index: {}]   ;;  %s638_s7 = inlined_call_operand.hbm [shape: f32[1,8], index: 7, kind: output, shape index: {}]  }
   0x1   :  { %v28_v0 = vld [vmem:[%s631_s0] sm:$0xff]  ;;  %v30_v3 = vld [vmem:[%s632_s1 + $0x8] sm:$0xff]  ;;  %464 = vset.pattern.permute.xlu0 %v506_v4  ;;  %v35_v5 = vld [vmem:[%s633_s2 + $0x10] sm:$0xff]  ;;  %465 = vset.pattern.permute.xlu1 %v506_v4 }
   0x2   :  { %v29_v1 = vld [vmem:[%s632_s1] sm:$0xff]  ;;  %412 = vmatprep.subr.msk.mxu0 %vm57_vm0, %v28_v0  ;;  %v31_v6 = vld [vmem:[%s632_s1 + $0x10] sm:$0xff]  ;;  %49 = vperm.xlu1 %465, %v35_v5   ;;  %v34_v7 = vld [vmem:[%s633_s2 + $0x8] sm:$0xff] }
   0x3   :  { %414 = vmatprep.mubr.msk.f32.mxu0 %vm57_vm0, %v29_v1  ;;  %v33_v2 = vld [vmem:[%s633_s2] sm:$0xff]  ;;  %413 = vmatpush3.xpose.msk.msra.mxu0 %vm57_vm0, %v28_v0 }
   0x4   :  { %39 = vperm.xlu0 %464, %v33_v2  }
   0x5   :  { %13 = vsyncpa [#allocation4], 0  ;;  %v36_v8 = vld [vmem:[%s633_s2 + $0x18] sm:$0xff]  ;;  %v166_v10 = vld [vmem:[%s635_s4] sm:$0xff]  ;;  %vm190_vm1 = vcmask 261120   ;;  %v507_v36 = vmov 0.0|0.0   ;;  %v294_v57 = vstv %s637_s6 }
   0x6   :  { %415 = vmatmul.mubr.msk.f32.vlgmr.msra.gmra.mrb[0].mxu0 %vm57_vm0, %v30_v3  ;;  %v32_v9 = vld [vmem:[%s632_s1 + $0x18] sm:$0xff]  ;;  %54 = vperm.xlu1 %465, %v36_v8   ;;  %v167_v11 = vld [vmem:[%s635_s4 + $0x8] sm:$0xff]  ;;  %v168_v12 = vld [vmem:[%s635_s4 + $0x10] sm:$0xff]  ;;  %vm508_vm2 = vmmov 0   ;;  %v509_v37 = vmov 0.0   ;;  %s510_s10 = smov [#allocation3]  }
   0x7   :  { %417 = vmatprep.mubr.msk.f32.mxu0 %vm57_vm0, %v31_v6  ;;  %v169_v13 = vld [vmem:[%s635_s4 + $0x18] sm:$0xff]  ;;  %v162_v14 = vld [vmem:[%s634_s3] sm:$0xff]  ;;  %v163_v33 = vld [vmem:[%s634_s3 + $0x8] sm:$0xff]  ;;  %453 = vmatprep.subr.bf16.mxu0 %v507_v36  ;;  %s376_s11 = sshll.u32 %s510_s10, 4  ;;  %vm368_vm3 = vcmask 57344   ;;  %s377_s11 = int_to_ptr.vmem [resolvable:$true] %s376_s11 }
   0x8   :  { %44 = vperm.xlu0 %464, %v34_v7   ;;  %428 = vmatprep.mubr.msk.f32.mxu1 %vm190_vm1, %v162_v14  ;;  %v164_v34 = vld [vmem:[%s634_s3 + $0x10] sm:$0xff]  ;;  %v165_v35 = vld [vmem:[%s634_s3 + $0x18] sm:$0xff]  ;;  %v292_v56 = vld [vmem:[%s636_s5] sm:$0x1]  ;;  %s482_s12 = scalar_lea.vmem %s377_s11, 16  ;;  %s486_s13 = scalar_lea.vmem %s377_s11, 32 }
   0x9   :  { %p483_p0 = scmp.ne.s32.totalorder %s377_s11, %s482_s12  ;;  %p487_p1 = scmp.lt.s32.totalorder %s377_s11, %s377_s11 }
   0xa   :  { %418 = vmatmul.mubr.msk.f32.gmra.mrb[2].mxu0 %vm57_vm0, %v32_v9  ;;  %177 = vperm.xlu1 %465, %v167_v11   ;;  %p488_p2 = scmp.lt.s32.totalorder %s486_s13, %s482_s12 }
   0xb   :  { %442 = vmatprep.mubr.msk.f32.mxu0 %vm508_vm2, %v509_v37 }
   0xc   :  { %172 = vperm.xlu0 %464, %v166_v10   ;;  %p489_p3 = por %p488_p2, %p487_p1 }
   0xe   :  { %187 = vperm.xlu1 %465, %v169_v13   ;;  %p490_p4 = pnand %p489_p3, %p483_p0 }
  0x10   :  { %182 = vperm.xlu0 %464, %v168_v12  }
  0x81   :  { %v50_v16 = vpop.permute.xlu1 %49 }
  0x83   :  { %v40_v15 = vpop.permute.xlu0 %39 }
  0x85   :  { %v55_v22 = vpop.permute.xlu1 %54 }
  0x87   :  { %v45_v17 = vpop.permute.xlu0 %44 }
  0x89   :  { %v178_v38 = vpop.permute.xlu1 %177 }
  0x8b   :  { %v173_v39 = vpop.permute.xlu0 %172 }
  0x8d   :  { %v188_v44 = vpop.permute.xlu1 %187 }
  0x8f   :  { %v183_v46 = vpop.permute.xlu0 %182 }
  0xd9   :  { %v416_v18 = vpop.f32.mrb[0].mxu0 }
  0xda   :  { %v145_v19 = vadd.f32 %v416_v18, %v45_v17  ;;  %v139_v20 = vpop.f32.mrb[1].mxu0 }
  0xdb   :  { %v140_v21 = vadd.f32 %v139_v20, %v40_v15 }
  0xdc   :  { %466 = vtanh.f32 %v145_v19 }
  0xdd   :  { %468 = vtanh.f32 %v140_v21  ;;  %v419_v23 = vpop.f32.mrb[2].mxu0 }
  0xde   :  { %v155_v24 = vadd.f32 %v419_v23, %v55_v22  ;;  %v149_v25 = vpop.f32.mrb[3].mxu0 }
  0xdf   :  { %v150_v26 = vadd.f32 %v149_v25, %v50_v16 }
  0xe0   :  { %470 = vtanh.f32 %v155_v24 }
  0xe1   :  { %472 = vtanh.f32 %v150_v26 }
  0xe6   :  { %v467_v27 = vpop.eup %466 }
  0xe7   :  { %v469_v28 = vpop.eup %468 }
  0xe8   :  { %v445_v29 = vpack.c.bf16 %v467_v27, %v469_v28 }
  0xea   :  { %v471_v30 = vpop.eup %470  ;;  %446 = vmatprep.subr.bf16.mxu1 %v445_v29 }
  0xeb   :  { %v473_v31 = vpop.eup %472  ;;  %448 = vmatpush3.bf16.msra.mxu1 %v445_v29 }
  0xec   :  { %v449_v32 = vpack.c.bf16 %v471_v30, %v473_v31 }
  0xee   :  { %450 = vmatprep.subr.bf16.mxu1 %v449_v32 }
  0xef   :  { %452 = vmatpush3.bf16.msra.mxu1 %v449_v32 }
  0xf2   :  { %429 = vmatmul.mubr.msk.f32.vlgmr.msra.gmra.mrb[0].mxu1 %vm190_vm1, %v163_v33 }
  0xf3   :  { %431 = vmatprep.mubr.msk.f32.mxu1 %vm190_vm1, %v164_v34 }
  0xf6   :  { %432 = vmatmul.mubr.msk.f32.gmra.mrb[2].mxu1 %vm190_vm1, %v165_v35 }
 0x1c5   :  { %v430_v40 = vpop.f32.mrb[0].mxu1 }
 0x1c6   :  { %v275_v41 = vadd.f32 %v430_v40, %v178_v38  ;;  %v269_v42 = vpop.f32.mrb[1].mxu1 }
 0x1c7   :  { %v270_v43 = vadd.f32 %v269_v42, %v173_v39 }
 0x1c8   :  { %474 = vtanh.f32 %v275_v41 }
 0x1c9   :  { %476 = vtanh.f32 %v270_v43  ;;  %v433_v45 = vpop.f32.mrb[2].mxu1 }
 0x1ca   :  { %v285_v47 = vadd.f32 %v433_v45, %v188_v44  ;;  %v279_v48 = vpop.f32.mrb[3].mxu1 }
 0x1cb   :  { %v280_v49 = vadd.f32 %v279_v48, %v183_v46 }
 0x1cc   :  { %478 = vtanh.f32 %v285_v47 }
 0x1cd   :  { %480 = vtanh.f32 %v280_v49 }
 0x1d2   :  { %v475_v50 = vpop.eup %474 }
 0x1d3   :  { %v477_v51 = vpop.eup %476 }
 0x1d4   :  { %v454_v52 = vpack.c.bf16 %v475_v50, %v477_v51 }
 0x1d6   :  { %v479_v53 = vpop.eup %478  ;;  %455 = vmatpush3.bf16.msra.mxu0 %v454_v52 }
 0x1d7   :  { %v481_v54 = vpop.eup %480  ;;  %456 = vmatprep.subr.bf16.mxu0 %v507_v36 }
 0x1d8   :  { %v457_v55 = vpack.c.bf16 %v479_v53, %v481_v54 }
 0x1da   :  { %458 = vmatpush3.bf16.msra.mxu0 %v457_v55 }
 0x1dd   :  { %443 = vmatmul.mubr.msk.f32.vlgmr.msra.gmra.mrb[4].mxu0 %vm190_vm1, %v292_v56 }
 0x2b0   :  { %v364_v58 = vpop.f32.mrb[4].mxu0 }
 0x2b1   :  { %v365_v59 = vadd.f32 %v364_v58, %v294_v57  ;;  %v444_v60 = vpop.f32.mrb[5].mxu0 }
 0x2b3   :  { %369 = vst.msk [vmem:[#allocation3] sm:$0x1] %vm368_vm3, %v365_v59 }
 0x2b4   :  { %493 = shalt.err (!%p490_p4)
}
 0x2b5   :  { %s494_s6 = scalar_lea.hbm %s638_s7, 16 }
 0x2b6   :  { %p495_p5 = scmp.ne.s32.totalorder %s638_s7, %s494_s6  ;;  %p498_p6 = scmp.lt.u32.totalorder %s494_s6, %s638_s7 }
 0x2b8   :  { %p500_p7 = pnand %p498_p6, %p495_p5 }
 0x2ba   :  { %503 = shalt.err (!%p500_p7)
}
 0x2bb   :  { %379 = dma.vmem_to_hbm [thread:$0]  %s377_s11, 16, %s638_s7, [#allocation4]  }
 0x2bc   :  { %504 = dma.done.wait [#allocation4], 16  }
 0x2bd   :  { %505 = vsyncadd [#allocation4], 4294967280 }
 0x2be   :  { %383 = vsyncpa [#allocation4], 1 }

</bundles_post_ra>
